<compile_context>
chip_gen: v7x
topology: tpu7x:2x2x1
jax: 0.10.0
libtpu: 0.0.40
codegen_flags: <defaults>
</compile_context>

<pallas_src>
import jax
import jax.numpy as jnp
from jax.experimental import pallas as pl
from jax.experimental.pallas import tpu as pltpu


def head_kernel_t(xt_ref, w1t_ref, b1_ref, w2t_ref, b2_ref, o_ref):
    """One lane-dense batch tile of the 2-layer head (transposed layout).

    xt_ref  : (Dx, TB)   activations, compute dtype (f32 or bf16)
    w1t_ref : (H2, Dx)   W1 x-part, pre-transposed + pre-cast to compute dtype
    b1_ref  : (H2, 1)    f32, z-path already folded in (b1 + z @ W1z)
    w2t_ref : (C,  H2)   f32, W2 pre-transposed
    b2_ref  : (C,  1)    f32
    o_ref   : (C,  TB)   f32
    """
    xt = xt_ref[...]                                              # (Dx, TB)

    # Linear #1 on concat([x, broadcast(z)]) == W1x^T @ x^T + (b1 + z @ W1z).
    h = jnp.dot(w1t_ref[...], xt, preferred_element_type=jnp.float32) + b1_ref[...]
    # Activation = nn.ReLU (f32 epilogue on the accumulator).
    h = jnp.maximum(h, 0.0)
    # TODO(synk): nn.Dropout(drop_rate) is inference-mode identity here (no RNG mask).

    # Linear #2 (final projection), tiny K=H2 / M=C; stays in f32.
    o = jnp.dot(w2t_ref[...], h, preferred_element_type=jnp.float32) + b2_ref[...]
    o_ref[...] = o.astype(o_ref.dtype)


def pack_params_t(params, z, dx, compute_dtype=jnp.float32):
    """One-time precompute (outside the kernel / outside the hot path):

    * fold the constant z-path into the first bias: b1' = z @ W1[Dx:] + b1
    * pre-transpose the weights for the lane-dense (transposed) kernel layout
    * pre-cast the x-part of W1 to the compute dtype (bf16 x-stream); keep the
      biases and the layer-2 projection in f32.
    """
    w1, b1, w2, b2 = params               # (H_in,H2), (1,H2), (H2,C), (1,C)
    h_in, h2 = w1.shape
    z_len = z.shape[0]
    assert h_in == dx + z_len
    c_out = w2.shape[1]

    b1_eff = jnp.dot(z.reshape(1, z_len), w1[dx:, :]) + b1.reshape(1, h2)   # (1, H2)
    w1t = jnp.asarray(w1[:dx, :].T, dtype=compute_dtype)                    # (H2, Dx)
    b1c = b1_eff.reshape(h2, 1).astype(jnp.float32)                         # (H2, 1)
    w2t = jnp.asarray(w2.T, dtype=jnp.float32)                              # (C, H2)
    b2c = b2.reshape(c_out, 1).astype(jnp.float32)                          # (C, 1)
    return w1t, b1c, w2t, b2c


def _pick_batch_tile(B, block_b):
    """Lane-dense batch tile: multiple of 128, >= 2 grid steps when possible."""
    if B <= 256:
        return B                          # single full-extent block (allowed)
    # Target at least 2 grid steps so the "parallel" axis splits over v7x's 2 TCs.
    tb = min(block_b, pl.cdiv(B, 2))
    tb = ((tb + 127) // 128) * 128        # lane-dense: multiple of 128
    if tb >= B:
        tb = B
    return tb


def head_forward_t(xt, w1t, b1, w2t, b2, *, block_b=16384):
    """Fast path: xt is (Dx, B) in the compute dtype; returns out^T of shape (C, B) f32.

    The caller is responsible for producing xt in the compute dtype (bf16 cast
    at the producer, not here) and in the transposed layout.
    """
    Dx, B = xt.shape
    H2, dxw = w1t.shape
    assert dxw == Dx
    assert b1.shape == (H2, 1)
    C = w2t.shape[0]
    assert w2t.shape == (C, H2) and b2.shape == (C, 1)
    assert xt.dtype == w1t.dtype, (
        "cast x at the producer (pack_params_t(compute_dtype=...)); the kernel "
        "expects matching MXU operand dtypes")

    tb = _pick_batch_tile(B, block_b)
    grid = (pl.cdiv(B, tb),)

    # VMEM per step (double-buffered) at TB=16384 bf16: ~2*0.75 MiB in +
    # ~2*0.25 MiB out + tiny resident params -> well under the scoped default
    # on all generations (incl. v7x's 64 MiB physical), no vmem_limit needed.
    return pl.pallas_call(
        head_kernel_t,
        out_shape=jax.ShapeDtypeStruct((C, B), jnp.float32),
        grid=grid,
        in_specs=[
            pl.BlockSpec((Dx, tb), lambda i: (0, i)),      # streamed batch tile
            pl.BlockSpec((H2, Dx), lambda i: (0, 0)),      # resident params
            pl.BlockSpec((H2, 1), lambda i: (0, 0)),
            pl.BlockSpec((C, H2), lambda i: (0, 0)),
            pl.BlockSpec((C, 1), lambda i: (0, 0)),
        ],
        out_specs=pl.BlockSpec((C, tb), lambda i: (0, i)),  # lane-dense store
        compiler_params=pltpu.CompilerParams(
            dimension_semantics=("parallel",)),             # 2 TCs on v7x
    )(xt, w1t, b1, w2t, b2)


def head_forward(x, w1t, b1, w2t, b2, *, block_b=16384):
    """Semantics-preserving wrapper matching Head.forward's row-major (B, Dx) -> (B, C).

    NOTE: the two boundary transposes are separate XLA ops; for best performance
    the producer should emit x already as (Dx, B) (or fuse this head into it)
    and call head_forward_t directly.
    """
    out_t = head_forward_t(jnp.transpose(x), w1t, b1, w2t, b2, block_b=block_b)
    return jnp.transpose(out_t)


def make_params(key, hidden_channels, out_channels):
    """Deterministic synthetic parameters matching Head(num_layers=2).

    Stored as (in, out), i.e. already-transposed PyTorch Linear weights.
    """
    h2 = hidden_channels // 2
    k1, k2, k3, k4 = jax.random.split(key, 4)
    w1 = jax.random.normal(k1, (hidden_channels, h2), jnp.float32) * 0.1
    b1 = jax.random.normal(k2, (1, h2), jnp.float32) * 0.1
    w2 = jax.random.normal(k3, (h2, out_channels), jnp.float32) * 0.1
    b2 = jax.random.normal(k4, (1, out_channels), jnp.float32) * 0.1
    return w1, b1, w2, b2


def reference(x, z, params):
    """Pure-JAX reference, concat exactly as in the PyTorch forward."""
    w1, b1, w2, b2 = params
    B = x.shape[0]
    cat = jnp.concatenate([x, jnp.broadcast_to(z, (B, z.shape[0]))], axis=1)
    h = jnp.maximum(cat @ w1 + b1, 0.0)
    return h @ w2 + b2


if __name__ == "__main__":
    Dx, Z = 24, 8
    hidden_channels = Dx + Z        # 32 (must equal concat width)
    out_channels = 4

    key = jax.random.PRNGKey(0)
    kx, kz, kp, kx2 = jax.random.split(key, 4)
    params = make_params(kp, hidden_channels, out_channels)
    z = jax.random.normal(kz, (Z,), jnp.float32)

    # One-time parameter pack (z folded into the bias, weights pre-transposed,
    # W1 pre-cast per compute dtype) -- done off the hot path.
    w1t_f32, b1c, w2t, b2c = pack_params_t(params, z, Dx, compute_dtype=jnp.float32)
    w1t_bf16, _, _, _ = pack_params_t(params, z, Dx, compute_dtype=jnp.bfloat16)

    # --- small-shape forward-semantics check (B=8), row-major convenience path ---
    x_small = jax.random.normal(kx, (8, Dx), jnp.float32)
    out_small = jax.block_until_ready(head_forward(x_small, w1t_f32, b1c, w2t, b2c))
    ref_small = reference(x_small, z, params)
    assert out_small.shape == (8, out_channels)
    assert jnp.allclose(out_small, ref_small, atol=1e-5, rtol=1e-5)

    # --- lane-dense transposed fast path, f32, grid > 1 ---
    B_big = 4096
    xt_f32 = jax.random.normal(kx2, (Dx, B_big), jnp.float32)   # producer emits (Dx, B)
    out_t = jax.block_until_ready(
        head_forward_t(xt_f32, w1t_f32, b1c, w2t, b2c, block_b=1024))
    ref_big = reference(xt_f32.T, z, params)
    assert out_t.shape == (out_channels, B_big)
    assert jnp.allclose(out_t.T, ref_big, atol=1e-5, rtol=1e-5)

    # --- bf16 x-stream: cast done at the producer, not inside the wrapper ---
    xt_bf16 = xt_f32.astype(jnp.bfloat16)
    out_t_bf16 = jax.block_until_ready(
        head_forward_t(xt_bf16, w1t_bf16, b1c, w2t, b2c))       # default big tiles
    ref_bf16 = reference(xt_bf16.T.astype(jnp.float32), z, params)
    assert jnp.allclose(out_t_bf16.T, ref_bf16, atol=5e-2, rtol=5e-2)

    # --- partial last block (B not a multiple of the 128-lane tile) ---
    B_odd = 1000
    xt_odd = xt_bf16[:, :B_odd]
    out_odd = jax.block_until_ready(
        head_forward_t(xt_odd, w1t_bf16, b1c, w2t, b2c, block_b=512))
    ref_odd = reference(xt_odd.T.astype(jnp.float32), z, params)
    assert out_odd.shape == (out_channels, B_odd)
    assert jnp.allclose(out_odd.T, ref_odd, atol=5e-2, rtol=5e-2)

    print("KERNEL_OK")
</pallas_src>

<mosaic_0001>
module attributes {stable_mosaic.version = 11 : i64} {
  func.func @head_kernel_t(%arg0: i32, %arg1: memref<24x8xf32, #tpu.memory_space<vmem>>, %arg2: memref<16x24xf32, #tpu.memory_space<vmem>>, %arg3: memref<16x1xf32, #tpu.memory_space<vmem>>, %arg4: memref<4x16xf32, #tpu.memory_space<vmem>>, %arg5: memref<4x1xf32, #tpu.memory_space<vmem>>, %arg6: memref<4x8xf32, #tpu.memory_space<vmem>>) attributes {dimension_semantics = [#tpu.dimension_semantics<parallel>], iteration_bounds = array<i64: 1>, scalar_prefetch = 0 : i64, scratch_operands = 0 : i64, tpu.core_type = #tpu.core_type<tc>, window_params = [{transform_indices = @transform_0, window_bounds = array<i64: 24, 8>}, {pipeline_mode = #tpu.pipeline_mode<synchronous>, transform_indices = @transform_1, window_bounds = array<i64: 16, 24>}, {pipeline_mode = #tpu.pipeline_mode<synchronous>, transform_indices = @transform_2, window_bounds = array<i64: 16, 1>}, {pipeline_mode = #tpu.pipeline_mode<synchronous>, transform_indices = @transform_3, window_bounds = array<i64: 4, 16>}, {pipeline_mode = #tpu.pipeline_mode<synchronous>, transform_indices = @transform_4, window_bounds = array<i64: 4, 1>}, {transform_indices = @transform_5, window_bounds = array<i64: 4, 8>}]} {
    %c0 = arith.constant 0 : index
    %c0_0 = arith.constant 0 : index
    %0 = vector.load %arg1[%c0, %c0_0] : memref<24x8xf32, #tpu.memory_space<vmem>>, vector<24x8xf32>
    %c0_1 = arith.constant 0 : index
    %c0_2 = arith.constant 0 : index
    %1 = vector.load %arg2[%c0_1, %c0_2] : memref<16x24xf32, #tpu.memory_space<vmem>>, vector<16x24xf32>
    %cst = arith.constant dense<0.000000e+00> : vector<16x8xf32>
    %2 = tpu.matmul %1, %0, %cst {dimension_numbers = #tpu.dot_dimension_numbers<[1], [0], [0], [1], [0, 0, 1, 1], [], []>} : vector<16x24xf32>, vector<24x8xf32>, vector<16x8xf32> -> vector<16x8xf32>
    %c0_3 = arith.constant 0 : index
    %c0_4 = arith.constant 0 : index
    %3 = vector.load %arg3[%c0_3, %c0_4] : memref<16x1xf32, #tpu.memory_space<vmem>>, vector<16x1xf32>
    %4 = vector.broadcast %3 : vector<16x1xf32> to vector<16x8xf32>
    %5 = arith.addf %2, %4 : vector<16x8xf32>
    %cst_5 = arith.constant 0.000000e+00 : f32
    %6 = vector.broadcast %cst_5 : f32 to vector<16x8xf32>
    %7 = arith.maximumf %5, %6 : vector<16x8xf32>
    %c0_6 = arith.constant 0 : index
    %c0_7 = arith.constant 0 : index
    %8 = vector.load %arg4[%c0_6, %c0_7] : memref<4x16xf32, #tpu.memory_space<vmem>>, vector<4x16xf32>
    %cst_8 = arith.constant dense<0.000000e+00> : vector<4x8xf32>
    %9 = tpu.matmul %8, %7, %cst_8 {dimension_numbers = #tpu.dot_dimension_numbers<[1], [0], [0], [1], [0, 0, 1, 1], [], []>} : vector<4x16xf32>, vector<16x8xf32>, vector<4x8xf32> -> vector<4x8xf32>
    %c0_9 = arith.constant 0 : index
    %c0_10 = arith.constant 0 : index
    %10 = vector.load %arg5[%c0_9, %c0_10] : memref<4x1xf32, #tpu.memory_space<vmem>>, vector<4x1xf32>
    %11 = vector.broadcast %10 : vector<4x1xf32> to vector<4x8xf32>
    %12 = arith.addf %9, %11 : vector<4x8xf32>
    %c0_11 = arith.constant 0 : index
    %c0_12 = arith.constant 0 : index
    %13 = vector.load %arg6[%c0_11, %c0_12] : memref<4x8xf32, #tpu.memory_space<vmem>>, vector<4x8xf32>
    tpu.vector_store %arg6[%c0_11, %c0_12], %12 {strides = array<i32>} : memref<4x8xf32, #tpu.memory_space<vmem>>, vector<4x8xf32>,
    return
  }
  func.func @transform_0(%arg0: i32) -> (i32, i32) {
    %c0_i32 = arith.constant 0 : i32
    %c0_i32_0 = arith.constant 0 : i32
    return %c0_i32, %arg0 : i32, i32
  }
  func.func @transform_1(%arg0: i32) -> (i32, i32) {
    %c0_i32 = arith.constant 0 : i32
    %c0_i32_0 = arith.constant 0 : i32
    %c0_i32_1 = arith.constant 0 : i32
    return %c0_i32, %c0_i32_0 : i32, i32
  }
  func.func @transform_2(%arg0: i32) -> (i32, i32) {
    %c0_i32 = arith.constant 0 : i32
    %c0_i32_0 = arith.constant 0 : i32
    %c0_i32_1 = arith.constant 0 : i32
    return %c0_i32, %c0_i32_0 : i32, i32
  }
  func.func @transform_3(%arg0: i32) -> (i32, i32) {
    %c0_i32 = arith.constant 0 : i32
    %c0_i32_0 = arith.constant 0 : i32
    %c0_i32_1 = arith.constant 0 : i32
    return %c0_i32, %c0_i32_0 : i32, i32
  }
  func.func @transform_4(%arg0: i32) -> (i32, i32) {
    %c0_i32 = arith.constant 0 : i32
    %c0_i32_0 = arith.constant 0 : i32
    %c0_i32_1 = arith.constant 0 : i32
    return %c0_i32, %c0_i32_0 : i32, i32
  }
  func.func @transform_5(%arg0: i32) -> (i32, i32) {
    %c0_i32 = arith.constant 0 : i32
    %c0_i32_0 = arith.constant 0 : i32
    return %c0_i32, %arg0 : i32, i32
  }
}

</mosaic_0001>

<bundles_post_ra>
// kernel: tpu_custom_call.1
= control target key start
LH: loop header
LB: loop body
LE: loop exit
PB: predicated region body
PF: predicated region fallthrough
CT: control target
= control target key end

     0   :  { %vm38_vm0 = vcmask 195584   ;;  %v284_v4 = vmov 0   ;;  %s360_s0 = inlined_call_operand.vmem [shape: f32[24,8], index: 0, kind: input, shape index: {}]   ;;  %s361_s1 = inlined_call_operand.vmem [shape: f32[16,24], index: 1, kind: input, shape index: {}]   ;;  %s362_s2 = inlined_call_operand.vmem [shape: f32[16,1], index: 2, kind: input, shape index: {}]   ;;  %s363_s3 = inlined_call_operand.vmem [shape: f32[4,16], index: 3, kind: input, shape index: {}]   ;;  %s364_s4 = inlined_call_operand.vmem [shape: f32[4,1], index: 4, kind: input, shape index: {}]   ;;  %s365_s5 = inlined_call_operand.hbm [shape: f32[4,8], index: 5, kind: output, shape index: {}]  }
   0x1   :  { %v21_v0 = vld [vmem:[%s360_s0] sm:$0xff]  ;;  %v22_v1 = vld [vmem:[%s360_s0 + $0x8] sm:$0xff]  ;;  %258 = vset.pattern.permute.xlu0 %v284_v4  ;;  %259 = vset.pattern.permute.xlu1 %v284_v4  ;;  %v23_v6 = vld [vmem:[%s360_s0 + $0x10] sm:$0xff] }
   0x2   :  { %v246_v2 = vpack.c.bf16 %v22_v1, %v21_v0  ;;  %v24_v3 = vld [vmem:[%s361_s1] sm:$0xff] }
   0x3   :  { %v26_v5 = vld [vmem:[%s362_s2] sm:$0xff]  ;;  %236 = vmatprep.mubr.msk.f32.mxu0 %vm38_vm0, %v24_v3 }
   0x4   :  { %30 = vperm.xlu0 %258, %v26_v5  }
   0x5   :  { %10 = vsyncpa [#allocation3], 0  ;;  %247 = vmatprep.subr.bf16.mxu0 %v246_v2  ;;  %v27_v7 = vld [vmem:[%s362_s2 + $0x8] sm:$0xff]  ;;  %v285_v9 = vmov 0.0|0.0   ;;  %vm286_vm1 = vmmov 0   ;;  %v287_v10 = vmov 0.0  }
   0x6   :  { %249 = vmatpush3.bf16.msra.mxu0 %v246_v2  ;;  %v25_v8 = vld [vmem:[%s361_s1 + $0x8] sm:$0xff]  ;;  %250 = vmatprep.subr.bf16.mxu1 %v285_v9  ;;  %v123_v11 = vld [vmem:[%s364_s4] sm:$0xf]  ;;  %vm129_vm2 = vcmask 130048   ;;  %s288_s8 = smov [#allocation2]   ;;  %vm203_vm3 = vcmask 60416  }
   0x7   :  { %234 = vmatprep.subr.mxu0 %v23_v6  ;;  %243 = vmatprep.mubr.msk.f32.mxu1 %vm286_vm1, %v287_v10  ;;  %v122_v21 = vld [vmem:[%s363_s3] sm:$0xf]  ;;  %s211_s4 = sshll.u32 %s288_s8, 4  ;;  %s212_s4 = int_to_ptr.vmem [resolvable:$true] %s211_s4 }
   0x8   :  { %35 = vperm.xlu0 %258, %v27_v7   ;;  %126 = vperm.xlu1 %259, %v123_v11   ;;  %s260_s9 = scalar_lea.vmem %s212_s4, 64  ;;  %p265_p1 = scmp.lt.s32.totalorder %s212_s4, %s212_s4 }
   0x9   :  { %p261_p0 = scmp.ne.s32.totalorder %s212_s4, %s260_s9  ;;  %p266_p2 = scmp.lt.s32.totalorder %s260_s9, %s260_s9 }
   0xa   :  { %235 = vmatpush3.msra.mxu0 %v23_v6 }
   0xb   :  { %237 = vmatmul.mubr.msk.f32.vlgmr.msra.gmra.mrb[0].mxu0 %vm38_vm0, %v25_v8  ;;  %p267_p3 = por %p266_p2, %p265_p1 }
   0xd   :  { %p268_p4 = pnand %p267_p3, %p261_p0 }
  0x83   :  { %v31_v12 = vpop.permute.xlu0 %30 }
  0x87   :  { %v36_v13 = vpop.permute.xlu0 %35  ;;  %v127_v22 = vpop.permute.xlu1 %126 }
  0xde   :  { %v238_v14 = vpop.f32.mrb[0].mxu0 }
  0xdf   :  { %v117_v15 = vadd.f32 %v238_v14, %v36_v13  ;;  %v111_v16 = vpop.f32.mrb[1].mxu0 }
  0xe0   :  { %v112_v17 = vadd.f32 %v111_v16, %v31_v12 }
  0xe1   :  { %v121_v18 = vmax.f32 %v117_v15, 0.0 }
  0xe2   :  { %v120_v19 = vmax.f32 %v112_v17, 0.0 }
  0xe4   :  { %v251_v20 = vpack.c.bf16 %v121_v18, %v120_v19 }
  0xe6   :  { %252 = vmatpush3.bf16.msra.mxu1 %v251_v20 }
  0xe9   :  { %244 = vmatmul.mubr.msk.f32.vlgmr.msra.gmra.mrb[0].mxu1 %vm129_vm2, %v122_v21 }
 0x1bc   :  { %v199_v23 = vpop.f32.mrb[0].mxu1 }
 0x1bd   :  { %v200_v24 = vadd.f32 %v199_v23, %v127_v22  ;;  %v245_v25 = vpop.f32.mrb[1].mxu1 }
 0x1bf   :  { %204 = vst.msk [vmem:[#allocation2] sm:$0xf] %vm203_vm3, %v200_v24 }
 0x1c0   :  { %271 = shalt.err (!%p268_p4)
}
 0x1c1   :  { %s272_s11 = scalar_lea.hbm %s365_s5, 64 }
 0x1c2   :  { %p273_p5 = scmp.ne.s32.totalorder %s365_s5, %s272_s11  ;;  %p276_p6 = scmp.lt.u32.totalorder %s272_s11, %s365_s5 }
 0x1c4   :  { %p278_p7 = pnand %p276_p6, %p273_p5 }
 0x1c6   :  { %281 = shalt.err (!%p278_p7)
}
 0x1c7   :  { %214 = dma.vmem_to_hbm [thread:$0]  %s212_s4, 64, %s365_s5, [#allocation3]  }
 0x1c8   :  { %282 = dma.done.wait [#allocation3], 64  }
 0x1c9   :  { %283 = vsyncadd [#allocation3], 4294967232 }
 0x1ca   :  { %218 = vsyncpa [#allocation3], 1 }

</bundles_post_ra>
